<compile_context>
chip_gen: v7x
topology: tpu7x:2x2x1
jax: 0.10.0
libtpu: 0.0.40
codegen_flags: <defaults>
</compile_context>

<pallas_src>
import jax
import jax.numpy as jnp
from jax import lax
from jax.experimental import pallas as pl
from jax.experimental.pallas import tpu as pltpu


def _round_up(x, m):
    return (x + m - 1) // m * m


def attention_kernel(annots_ref, bias_ref, wa_t_ref, v_ref, out_ref):
    # annots_ref: (1, TT, A)   bias_ref: (1, H, 1)   wa_t_ref: (H, A)
    # v_ref:      (H, 1)       out_ref:  (1, 1, TT)
    ann = annots_ref[0]                                     # (TT, A), row-major
    # (H, A) x (TT, A) contracting on A -> (H, TT): rows-in-lanes layout.
    pa_t = lax.dot_general(
        wa_t_ref[...], ann,
        dimension_numbers=(((1,), (1,)), ((), ())),
        preferred_element_type=jnp.float32)                 # (H, TT)
    # Folded bias (query projection + bq + ba) broadcast across lanes.
    s_t = jnp.tanh(pa_t + bias_ref[0])                      # (H, TT) VPU + EUP
    # v-projection as VPU multiply + sublane reduce -> lane-dense (1, TT).
    scores = jnp.sum(s_t * v_ref[...], axis=0, keepdims=True)
    out_ref[...] = scores[None, :, :]                       # (1, 1, TT)


def attention_forward(annots, query, wq, bq, wa, ba, v, *, stream_dtype=None):
    """annots: (B, T, A); query: (B, Q) or (B, 1, Q). Returns (B, T) f32."""
    if query.ndim == 3:
        query = query[:, 0, :]                              # undo unsqueeze
    annots = annots.astype(jnp.float32)
    query = query.astype(jnp.float32)

    B, T, A = annots.shape
    H = wq.shape[-1]

    # Query projection done once (single small (B,Q)@(Q,H) matmul) and both
    # Linear biases folded into one per-batch bias column. Shaped (B, H, 1)
    # so the per-step BlockSpec (1, H, 1) has fully aligned trailing dims.
    bias = query @ wq + jnp.reshape(bq, (1, H)) + jnp.reshape(ba, (1, H))
    bias3 = bias.astype(jnp.float32)[:, :, None]            # (B, H, 1)

    # T tiling: the T tile is the lane dim of the compute tile.  128-aligned,
    # capped at 1024 (fits v7x's 64 MiB VMEM comfortably; big enough to
    # amortize the per-grid-step pipeline overhead on v5e/v6e).
    T128 = _round_up(T, 128)
    TT = T128 if T128 <= 1024 else 1024
    T_pad = _round_up(T, TT)
    if T_pad != T:
        annots = jnp.pad(annots, ((0, 0), (0, T_pad - T), (0, 0)))
    GT = T_pad // TT

    wa_t = wa.T.astype(jnp.float32)                         # (H, A), tiny
    v2 = jnp.reshape(v, (H, 1)).astype(jnp.float32)

    # Optional bf16 streaming of the dominant annots stream + Wa for v6e/v7x
    # (kernel accumulates in f32; elementwise math stays f32 for v5e).
    if stream_dtype is not None:
        annots = annots.astype(stream_dtype)
        wa_t = wa_t.astype(stream_dtype)
    # TODO(synk): at real model sizes, pad A and H to 128 (256 on v6e/v7x) so
    # the (H, A) x (A, TT) MXU pass is not mostly zero-fill, and consider
    # pipeline_mode=pl.Buffered(3) on the annots spec if DMA is exposed.

    out = pl.pallas_call(
        attention_kernel,
        out_shape=jax.ShapeDtypeStruct((B, 1, T_pad), jnp.float32),
        grid_spec=pltpu.PrefetchScalarGridSpec(
            num_scalar_prefetch=0,
            grid=(B, GT),
            in_specs=[
                pl.BlockSpec((1, TT, A), lambda b, t: (b, t, 0)),  # annots tile
                pl.BlockSpec((1, H, 1), lambda b, t: (b, 0, 0)),   # folded bias
                pl.BlockSpec((H, A), lambda b, t: (0, 0)),         # Wa^T (resident)
                pl.BlockSpec((H, 1), lambda b, t: (0, 0)),         # v    (resident)
            ],
            out_specs=pl.BlockSpec((1, 1, TT), lambda b, t: (b, 0, t)),
        ),
        compiler_params=pltpu.CompilerParams(
            dimension_semantics=("parallel", "parallel"),
            vmem_limit_bytes=32 * 1024 * 1024,
        ),
    )(annots, bias3, wa_t, v2)

    return out.reshape(B, T_pad)[:, :T]


def reference_forward(annots, query, wq, bq, wa, ba, v):
    if query.ndim == 2:
        query = query[:, None, :]
    pq = query @ wq + jnp.reshape(bq, (1, -1))      # (B, 1, H)
    pa = annots @ wa + jnp.reshape(ba, (1, -1))     # (B, T, H)
    return (jnp.tanh(pq + pa) @ jnp.reshape(v, (-1, 1)))[..., 0]


if __name__ == "__main__":
    # Small shapes consistent with the module.
    B, T = 2, 8
    query_dim, annot_dim, hidden_dim = 32, 16, 32

    key = jax.random.PRNGKey(0)
    k = jax.random.split(key, 7)
    annots = jax.random.normal(k[0], (B, T, annot_dim), dtype=jnp.float32)
    query = jax.random.normal(k[1], (B, query_dim), dtype=jnp.float32)

    # Deterministic synthetic parameters (Linear weights stored as (in, out)).
    wq = jax.random.normal(k[2], (query_dim, hidden_dim), dtype=jnp.float32) * 0.1
    bq = jax.random.normal(k[3], (hidden_dim,), dtype=jnp.float32) * 0.1
    wa = jax.random.normal(k[4], (annot_dim, hidden_dim), dtype=jnp.float32) * 0.1
    ba = jax.random.normal(k[5], (hidden_dim,), dtype=jnp.float32) * 0.1
    v = jax.random.normal(k[6], (hidden_dim, 1), dtype=jnp.float32) * 0.1

    out = attention_forward(annots, query, wq, bq, wa, ba, v)
    out = jax.block_until_ready(out)

    ref = reference_forward(annots, query, wq, bq, wa, ba, v)
    assert out.shape == (B, T)
    assert jnp.allclose(out, ref, atol=1e-5, rtol=1e-5), "mismatch vs reference"

    print("KERNEL_OK")
</pallas_src>

<mosaic_0001>
module attributes {stable_mosaic.version = 11 : i64} {
  func.func @attention_kernel(%arg0: i32, %arg1: i32, %arg2: memref<1x128x16xf32, #tpu.memory_space<vmem>>, %arg3: memref<1x32x1xf32, #tpu.memory_space<vmem>>, %arg4: memref<32x16xf32, #tpu.memory_space<vmem>>, %arg5: memref<32x1xf32, #tpu.memory_space<vmem>>, %arg6: memref<1x1x128xf32, #tpu.memory_space<vmem>>) attributes {dimension_semantics = [#tpu.dimension_semantics<parallel>, #tpu.dimension_semantics<parallel>], iteration_bounds = array<i64: 2, 1>, scalar_prefetch = 0 : i64, scratch_operands = 0 : i64, tpu.core_type = #tpu.core_type<tc>, window_params = [{transform_indices = @transform_0, window_bounds = array<i64: 1, 128, 16>}, {transform_indices = @transform_1, window_bounds = array<i64: 1, 32, 1>}, {pipeline_mode = #tpu.pipeline_mode<synchronous>, transform_indices = @transform_2, window_bounds = array<i64: 32, 16>}, {pipeline_mode = #tpu.pipeline_mode<synchronous>, transform_indices = @transform_3, window_bounds = array<i64: 32, 1>}, {transform_indices = @transform_4, window_bounds = array<i64: 1, 1, 128>}]} {
    %c0 = arith.constant 0 : index
    %c0_0 = arith.constant 0 : index
    %c0_1 = arith.constant 0 : index
    %0 = vector.load %arg2[%c0, %c0_0, %c0_1] : memref<1x128x16xf32, #tpu.memory_space<vmem>>, vector<1x128x16xf32>
    %1 = vector.shape_cast %0 : vector<1x128x16xf32> to vector<128x16xf32>
    %c0_2 = arith.constant 0 : index
    %c0_3 = arith.constant 0 : index
    %2 = vector.load %arg4[%c0_2, %c0_3] : memref<32x16xf32, #tpu.memory_space<vmem>>, vector<32x16xf32>
    %cst = arith.constant dense<0.000000e+00> : vector<32x128xf32>
    %3 = tpu.matmul %2, %1, %cst {dimension_numbers = #tpu.dot_dimension_numbers<[1], [1], [0], [0], [0, 0, 1, 0], [], []>} : vector<32x16xf32>, vector<128x16xf32>, vector<32x128xf32> -> vector<32x128xf32>
    %c0_4 = arith.constant 0 : index
    %c0_5 = arith.constant 0 : index
    %c0_6 = arith.constant 0 : index
    %4 = vector.load %arg3[%c0_4, %c0_5, %c0_6] : memref<1x32x1xf32, #tpu.memory_space<vmem>>, vector<1x32x1xf32>
    %5 = vector.shape_cast %4 : vector<1x32x1xf32> to vector<32x1xf32>
    %6 = vector.broadcast %5 : vector<32x1xf32> to vector<32x128xf32>
    %7 = arith.addf %3, %6 : vector<32x128xf32>
    %8 = math.tanh %7 : vector<32x128xf32>
    %c0_7 = arith.constant 0 : index
    %c0_8 = arith.constant 0 : index
    %9 = vector.load %arg5[%c0_7, %c0_8] : memref<32x1xf32, #tpu.memory_space<vmem>>, vector<32x1xf32>
    %10 = vector.broadcast %9 : vector<32x1xf32> to vector<32x128xf32>
    %11 = arith.mulf %8, %10 : vector<32x128xf32>
    %cst_9 = arith.constant dense<0.000000e+00> : vector<128xf32>
    %12 = vector.multi_reduction <add>, %11, %cst_9 [0] : vector<32x128xf32> to vector<128xf32>
    %13 = vector.shape_cast %12 : vector<128xf32> to vector<1x128xf32>
    %14 = vector.shape_cast %13 : vector<1x128xf32> to vector<1x1x128xf32>
    %c0_10 = arith.constant 0 : index
    %c0_11 = arith.constant 0 : index
    %c0_12 = arith.constant 0 : index
    %15 = vector.load %arg6[%c0_10, %c0_11, %c0_12] : memref<1x1x128xf32, #tpu.memory_space<vmem>>, vector<1x1x128xf32>
    tpu.vector_store %arg6[%c0_10, %c0_11, %c0_12], %14 {strides = array<i32>} : memref<1x1x128xf32, #tpu.memory_space<vmem>>, vector<1x1x128xf32>,
    return
  }
  func.func @transform_0(%arg0: i32, %arg1: i32) -> (i32, i32, i32) {
    %c0_i32 = arith.constant 0 : i32
    %c0_i32_0 = arith.constant 0 : i32
    return %arg0, %arg1, %c0_i32 : i32, i32, i32
  }
  func.func @transform_1(%arg0: i32, %arg1: i32) -> (i32, i32, i32) {
    %c0_i32 = arith.constant 0 : i32
    %c0_i32_0 = arith.constant 0 : i32
    %c0_i32_1 = arith.constant 0 : i32
    return %arg0, %c0_i32, %c0_i32_0 : i32, i32, i32
  }
  func.func @transform_2(%arg0: i32, %arg1: i32) -> (i32, i32) {
    %c0_i32 = arith.constant 0 : i32
    %c0_i32_0 = arith.constant 0 : i32
    %c0_i32_1 = arith.constant 0 : i32
    return %c0_i32, %c0_i32_0 : i32, i32
  }
  func.func @transform_3(%arg0: i32, %arg1: i32) -> (i32, i32) {
    %c0_i32 = arith.constant 0 : i32
    %c0_i32_0 = arith.constant 0 : i32
    %c0_i32_1 = arith.constant 0 : i32
    return %c0_i32, %c0_i32_0 : i32, i32
  }
  func.func @transform_4(%arg0: i32, %arg1: i32) -> (i32, i32, i32) {
    %c0_i32 = arith.constant 0 : i32
    %c0_i32_0 = arith.constant 0 : i32
    return %arg0, %c0_i32, %arg1 : i32, i32, i32
  }
}

</mosaic_0001>

<bundles_post_ra>
// kernel: tpu_custom_call.1
= control target key start
LH: loop header
LB: loop body
LE: loop exit
PB: predicated region body
PF: predicated region fallthrough
CT: control target
= control target key end

     0   :  { %9 = vsyncpa [#allocation3], 0  ;;  %s1133_s0 = inlined_call_operand.vmem [shape: f32[2,128,16], index: 0, kind: input, shape index: {}]   ;;  %s1134_s1 = inlined_call_operand.vmem [shape: f32[2,32,1], index: 1, kind: input, shape index: {}]   ;;  %s1135_s2 = inlined_call_operand.vmem [shape: f32[32,16], index: 2, kind: input, shape index: {}]   ;;  %s1136_s3 = inlined_call_operand.vmem [shape: f32[32,1], index: 3, kind: input, shape index: {}]   ;;  %s1137_s4 = inlined_call_operand.hbm [shape: f32[2,1,128], index: 4, kind: output, shape index: {}]  }
   0x1   :  { %11 = vsyncpa [#allocation3 + $0x1], 0  ;;  %s902_s15 = smov 0   ;;  %s904_s16 = smov 0  }
   0x2   :  { %s906_s17 = smov 0   ;;  %s908_s18 = smov 0  }
   0x3   :  { %s910_s19 = smov 0   ;;  %s912_s20 = smov 0  }
   0x4 LB: > { %s573_s21 = sadd.s32 4294967295, %s873_s20   ;;  %s574_s22 = sadd.s32 4294967294, %s873_s20   ;;  %s873_s20 = sphi %s912_s20, %s17_s20   ;;  %s869_s19 = sphi %s910_s19, %s1146_s19   ;;  %s865_s18 = sphi %s908_s18, %s1145_s18   ;;  %s861_s17 = sphi %s906_s17, %s1144_s17   ;;  %s857_s16 = sphi %s904_s16, %s1143_s16   ;;  %s853_s15 = sphi %s902_s15, %s1142_s15  }
   0x5   : > { %s29_s23 = sadd.s32 1, %s869_s19  ;;  %s134_s24 = sadd.s32 1, %s861_s17 }
   0x6   : > { %p31_p0 = scmp.ge.s32.totalorder %s29_s23, 2  ;;  %p144_p1 = scmp.ne.s32.totalorder %s861_s17, %s857_s16 }
   0x7   : > { %p145_p2 = scmp.eq.s32.totalorder %s573_s21, 1  ;;  %p150_p3 = scmp.ne.s32.totalorder %s857_s16, %s853_s15 }
   0x8   : > { %s1148_s23 = smov (%p31_p0, %s29_s23), 0  ;;  %p151_p5 = scmp.eq.s32.totalorder %s574_s22, 1 }
   0x9   : > { %p942_p4 = por %p145_p2, %p144_p1  ;;  %s129_s26 = ssub.s32 %s869_s19, %s1148_s23 }
   0xa   : > { %p577_p6 = scmp.ge.s32.totalorder %s873_s20, 1  ;;  %p132_p7 = scmp.eq.s32.totalorder %s129_s26, 0 }
   0xb   : > { %p949_p8 = por %p151_p5, %p150_p3  ;;  %p196_p9 = scmp.lt.s32.totalorder %s873_s20, 3 }
   0xc   : > { %s955_s28 = scalar_select %p132_p7, %s861_s17, %s134_s24  }
   0xd   : > { %p197_p10 = pnand %p577_p6, %p196_p9 }
   0xe   : > { %p231_p11 = scmp.lt.s32.totalorder (!%p197_p10), %s865_s18, 1  ;;  %vm289_vm0 = vcmask (!%p197_p10), 130048   ;;  %v261_v0 = vld [vmem:[%s1135_s2] sm:$0xff] (!%p197_p10)  ;;  %v263_v1 = vld [vmem:[%s1135_s2 + $0x10] sm:$0xff] (!%p197_p10)  ;;  %v875_v2 = vmov (!%p197_p10), 0   ;;  %v440_v18 = vld [vmem:[%s1136_s3 + $0x8] sm:$0xff] (!%p197_p10) }
   0xf   : > { %200 = sbr.rel (%p197_p10) target bundleno = 353 (0x161), region = 36  ;;  %659 = vmatprep.mubr.msk.f32.mxu0 (!%p197_p10), %vm289_vm0, %v261_v0  ;;  %662 = vmatprep.mubr.msk.f32.mxu1 (!%p197_p10), %vm289_vm0, %v263_v1  ;;  %vm974_vm1 = vmpackc.low (!%p197_p10), %vm289_vm0, %vm289_vm0  ;;  %v439_v17 = vld [vmem:[%s1136_s3] sm:$0xff] (!%p197_p10)  ;;  %v441_v21 = vld [vmem:[%s1136_s3 + $0x10] sm:$0xff] (!%p197_p10)  ;;  %s602_s13 = sshll.u32 (!%p197_p10), %s865_s18, 4 }
  0x10   : > { %785 = vset.pattern.permute.xlu0 (!%p197_p10), %v875_v2  ;;  %786 = vset.pattern.permute.xlu1 (!%p197_p10), %v875_v2  ;;  %v442_v22 = vld [vmem:[%s1136_s3 + $0x18] sm:$0xff] (!%p197_p10)  ;;  %v262_v36 = vld [vmem:[%s1135_s2 + $0x8] sm:$0xff] (!%p197_p10)  ;;  %s1086_s26 = scalar_lea.hbm (!%p197_p10), %s1137_s4, %s602_s13 }
  0x11   : > { %v264_v37 = vld [vmem:[%s1135_s2 + $0x18] sm:$0xff] (!%p197_p10) }
  0x16   : > { %s232_s7 = scalar_select %p231_p11, %s865_s18, 1 }
  0x17   : > { %s876_s18 = smov [#allocation2]  }
  0x18   : > { %s605_s8 = sshll.u32 %s232_s7, 7  ;;  %s606_s12 = sshll.u32 %s232_s7, 5 }
  0x19   : > { %s970_s11 = scalar_lea.vmem %s1133_s0, %s605_s8  ;;  %s244_s21 = scalar_lea.vmem %s1134_s1, %s606_s12 }
  0x1a   : > { %v245_v4 = vld [vmem:[%s970_s11] sm:$0xff]  ;;  %v246_v5 = vld [vmem:[%s970_s11 + $0x8] sm:$0xff]  ;;  %v247_v6 = vld [vmem:[%s970_s11 + $0x10] sm:$0xff]  ;;  %s228_s12 = sand.u32 1, %s857_s16   ;;  %s799_s5 = sshll.u32 %s876_s18, 4  ;;  %s800_s5 = int_to_ptr.vmem [resolvable:$false] %s799_s5 }
  0x1b   : > { %v665_v7 = vpack.c.bf16 %v246_v5, %v245_v4  ;;  %v248_v8 = vld [vmem:[%s970_s11 + $0x18] sm:$0xff]  ;;  %v265_v10 = vld [vmem:[%s244_s21] sm:$0xff]  ;;  %v267_v11 = vld [vmem:[%s244_s21 + $0x10] sm:$0xff]  ;;  %s229_s14 = scalar_lea.vmem [#allocation2], %s228_s12  ;;  %s478_s29 = scalar_lea.sflag [#allocation3], %s228_s12 }
  0x1c   : > { %v671_v9 = vpack.c.bf16 %v248_v8, %v247_v6  ;;  %v249_v12 = vld [vmem:[%s970_s11 + $0x20] sm:$0xff]  ;;  %v250_v13 = vld [vmem:[%s970_s11 + $0x28] sm:$0xff]  ;;  %271 = vperm.xlu0 %785, %v265_v10   ;;  %281 = vperm.xlu1 %786, %v267_v11   ;;  %v268_v15 = vld [vmem:[%s244_s21 + $0x18] sm:$0xff]  ;;  %s801_s6 = scalar_lea.vmem %s800_s5, 32 }
  0x1d   : > { %667 = vmatprep.subr.msk.bf16.mxu0 %vm974_vm1, %v665_v7  ;;  %713 = vmatprep.subr.msk.bf16.mxu1 %vm974_vm1, %v665_v7  ;;  %v266_v14 = vld [vmem:[%s244_s21 + $0x8] sm:$0xff]  ;;  %v677_v16 = vpack.c.bf16 %v250_v13, %v249_v12  ;;  %v251_v19 = vld [vmem:[%s970_s11 + $0x30] sm:$0xff]  ;;  %v252_v20 = vld [vmem:[%s970_s11 + $0x38] sm:$0xff]  ;;  %s491_s21 = sshll.u32 %s229_s14, 4  ;;  %s1088_s21 = int_to_ptr.vmem [resolvable:$true] %s491_s21 }
  0x1e   : > { %670 = vmatpush3.bf16.xpose.msk.msra.mxu0 %vm974_vm1, %v665_v7  ;;  %721 = vmatpush3.bf16.xpose.msk.msra.mxu1 %vm974_vm1, %v665_v7  ;;  %v683_v23 = vpack.c.bf16 %v252_v20, %v251_v19  ;;  %v253_v24 = vld [vmem:[%s970_s11 + $0x40] sm:$0xff]  ;;  %v254_v25 = vld [vmem:[%s970_s11 + $0x48] sm:$0xff]  ;;  %v255_v27 = vld [vmem:[%s970_s11 + $0x50] sm:$0xff]  ;;  %s795_s30 = scalar_lea.vmem %s1088_s21, 16  ;;  %p802_p1 = scmp.lt.s32.totalorder %s1088_s21, %s800_s5 }
  0x1f   : > { %673 = vmatprep.subr.msk.bf16.mxu0 %vm974_vm1, %v671_v9  ;;  %714 = vmatprep.subr.msk.bf16.mxu1 %vm974_vm1, %v671_v9  ;;  %v689_v26 = vpack.c.bf16 %v254_v25, %v253_v24  ;;  %v256_v28 = vld [vmem:[%s970_s11 + $0x58] sm:$0xff]  ;;  %v257_v30 = vld [vmem:[%s970_s11 + $0x60] sm:$0xff]  ;;  %v258_v31 = vld [vmem:[%s970_s11 + $0x68] sm:$0xff]  ;;  %p796_p12 = scmp.ne.s32.totalorder %s1088_s21, %s795_s30  ;;  %p803_p2 = scmp.lt.s32.totalorder %s801_s6, %s795_s30 }
  0x20   : > { %276 = vperm.xlu0 %785, %v266_v14   ;;  %286 = vperm.xlu1 %786, %v268_v15   ;;  %v695_v29 = vpack.c.bf16 %v256_v28, %v255_v27  ;;  %v701_v32 = vpack.c.bf16 %v258_v31, %v257_v30  ;;  %v259_v33 = vld [vmem:[%s970_s11 + $0x70] sm:$0xff]  ;;  %v260_v34 = vld [vmem:[%s970_s11 + $0x78] sm:$0xff] }
  0x21   : > { %v707_v35 = vpack.c.bf16 %v260_v34, %v259_v33  ;;  %p797_p13 = pnand %p796_p12, %p942_p4  ;;  %p804_p3 = por %p803_p2, %p802_p1 }
  0x23   : > { %p798_p0 = pneg %p797_p13 }
  0x24   : > { %445 = vperm.xlu0 %785, %v439_v17   ;;  %450 = vperm.xlu1 %786, %v440_v18  }
  0x25   : > { %p805_p5 = pnand %p804_p3, %p798_p0 }
  0x26   : > { %676 = vmatpush3.bf16.xpose.msk.msra.mxu0 %vm974_vm1, %v671_v9  ;;  %722 = vmatpush3.bf16.xpose.msk.msra.mxu1 %vm974_vm1, %v671_v9 }
  0x27   : > { %679 = vmatprep.subr.msk.bf16.mxu0 %vm974_vm1, %v677_v16  ;;  %715 = vmatprep.subr.msk.bf16.mxu1 %vm974_vm1, %v677_v16 }
  0x28   : > { %455 = vperm.xlu0 %785, %v441_v21   ;;  %460 = vperm.xlu1 %786, %v442_v22  }
  0x2e   : > { %682 = vmatpush3.bf16.xpose.msk.msra.mxu0 %vm974_vm1, %v677_v16  ;;  %723 = vmatpush3.bf16.xpose.msk.msra.mxu1 %vm974_vm1, %v677_v16 }
  0x2f   : > { %685 = vmatprep.subr.msk.bf16.mxu0 %vm974_vm1, %v683_v23  ;;  %716 = vmatprep.subr.msk.bf16.mxu1 %vm974_vm1, %v683_v23 }
  0x36   : > { %688 = vmatpush3.bf16.xpose.msk.msra.mxu0 %vm974_vm1, %v683_v23  ;;  %724 = vmatpush3.bf16.xpose.msk.msra.mxu1 %vm974_vm1, %v683_v23 }
  0x37   : > { %691 = vmatprep.subr.msk.bf16.mxu0 %vm974_vm1, %v689_v26  ;;  %717 = vmatprep.subr.msk.bf16.mxu1 %vm974_vm1, %v689_v26 }
  0x3e   : > { %694 = vmatpush3.bf16.xpose.msk.msra.mxu0 %vm974_vm1, %v689_v26  ;;  %725 = vmatpush3.bf16.xpose.msk.msra.mxu1 %vm974_vm1, %v689_v26 }
  0x3f   : > { %697 = vmatprep.subr.msk.bf16.mxu0 %vm974_vm1, %v695_v29  ;;  %718 = vmatprep.subr.msk.bf16.mxu1 %vm974_vm1, %v695_v29 }
  0x46   : > { %700 = vmatpush3.bf16.xpose.msk.msra.mxu0 %vm974_vm1, %v695_v29  ;;  %726 = vmatpush3.bf16.xpose.msk.msra.mxu1 %vm974_vm1, %v695_v29 }
  0x47   : > { %703 = vmatprep.subr.msk.bf16.mxu0 %vm974_vm1, %v701_v32  ;;  %719 = vmatprep.subr.msk.bf16.mxu1 %vm974_vm1, %v701_v32 }
  0x4e   : > { %706 = vmatpush3.bf16.xpose.msk.msra.mxu0 %vm974_vm1, %v701_v32  ;;  %727 = vmatpush3.bf16.xpose.msk.msra.mxu1 %vm974_vm1, %v701_v32 }
  0x4f   : > { %709 = vmatprep.subr.msk.bf16.mxu0 %vm974_vm1, %v707_v35  ;;  %720 = vmatprep.subr.msk.bf16.mxu1 %vm974_vm1, %v707_v35 }
  0x56   : > { %712 = vmatpush3.bf16.xpose.msk.msra.mxu0 %vm974_vm1, %v707_v35  ;;  %728 = vmatpush3.bf16.xpose.msk.msra.mxu1 %vm974_vm1, %v707_v35 }
  0x5d   : > { %660 = vmatmul.mubr.msk.f32.vlgmr.msra.gmra.mrb[0].mxu0 %vm289_vm0, %v262_v36  ;;  %663 = vmatmul.mubr.msk.f32.vlgmr.msra.gmra.mrb[0].mxu1 %vm289_vm0, %v264_v37 }
  0x9b   : > { %v272_v38 = vpop.permute.xlu0 %271  ;;  %v282_v39 = vpop.permute.xlu1 %281 }
  0x9f   : > { %v277_v40 = vpop.permute.xlu0 %276  ;;  %v287_v46 = vpop.permute.xlu1 %286 }
  0xa3   : > { %v446_v50 = vpop.permute.xlu0 %445  ;;  %v451_v52 = vpop.permute.xlu1 %450 }
  0xa7   : > { %v456_v58 = vpop.permute.xlu0 %455  ;;  %v461_v61 = vpop.permute.xlu1 %460 }
 0x130   : > { %v661_v41 = vpop.f32.mrb[0].mxu0  ;;  %v664_v42 = vpop.f32.mrb[0].mxu1 }
 0x131   : > { %v422_v43 = vadd.f32 %v661_v41, %v277_v40  ;;  %v416_v44 = vpop.f32.mrb[1].mxu0  ;;  %v426_v45 = vpop.f32.mrb[1].mxu1  ;;  %v432_v49 = vadd.f32 %v664_v42, %v287_v46 }
 0x132   : > { %v417_v47 = vadd.f32 %v416_v44, %v272_v38  ;;  %v427_v48 = vadd.f32 %v426_v45, %v282_v39 }
 0x133   : > { %787 = vtanh.f32 %v422_v43 }
 0x134   : > { %789 = vtanh.f32 %v417_v47 }
 0x135   : > { %791 = vtanh.f32 %v427_v48 }
 0x136   : > { %793 = vtanh.f32 %v432_v49 }
 0x13d   : > { %v788_v51 = vpop.eup %787 }
 0x13e   : > { %v464_v53 = vmul.f32 %v788_v51, %v451_v52  ;;  %v790_v54 = vpop.eup %789 }
 0x13f   : > { %v792_v55 = vpop.eup %791  ;;  %v463_v56 = vmul.f32 %v790_v54, %v446_v50 }
 0x140   : > { %v794_v57 = vpop.eup %793  ;;  %v465_v60 = vmul.f32 %v792_v55, %v456_v58 }
 0x141   : > { %v467_v59 = vadd.f32 %v464_v53, %v463_v56  ;;  %v466_v62 = vmul.f32 %v794_v57, %v461_v61 }
 0x143   : > { %v468_v63 = vadd.f32 %v467_v59, %v465_v60 }
 0x145   : > { %v469_v0 = vadd.f32 %v468_v63, %v466_v62 }
 0x147   : > { %v470_v1 = vrot.slane %v469_v0, 4 }
 0x149   : > { %v471_v2 = vadd.f32 %v470_v1, %v469_v0 }
 0x14b   : > { %v472_v3 = vrot.slane %v471_v2, 2 }
 0x14d   : > { %v473_v4 = vadd.f32 %v472_v3, %v471_v2 }
 0x14f   : > { %v474_v5 = vrot.slane %v473_v4, 1 }
 0x151   : > { %v475_v6 = vadd.f32 %v474_v5, %v473_v4 }
 0x153   : > { %476 = vst [vmem:[%s229_s14] sm:$0x1] %v475_v6 }
 0x154   : > { %808 = shalt.err (!%p805_p5)
}
 0x155   : > { %s809_s7 = scalar_lea.hbm %s1086_s26, 16  ;;  %s813_s10 = scalar_lea.hbm %s1137_s4, 32 }
 0x156   : > { %p810_p6 = scmp.ne.s32.totalorder %s1086_s26, %s809_s7  ;;  %p814_p10 = scmp.lt.u32.totalorder %s1086_s26, %s1137_s4 }
 0x157   : > { %p815_p11 = scmp.lt.u32.totalorder %s813_s10, %s809_s7  ;;  %p817_p13 = scmp.lt.u32.totalorder %s809_s7, %s1086_s26 }
 0x158   : > { %p811_p7 = pnand %p810_p6, %p942_p4 }
 0x159   : > { %p816_p12 = por %p815_p11, %p814_p10 }
 0x15a   : > { %p812_p9 = pneg %p811_p7 }
 0x15b   : > { %p818_p0 = por %p817_p13, %p816_p12 }
 0x15d   : > { %p819_p1 = pnand %p818_p0, %p812_p9 }
 0x15f   : > { %822 = shalt.err (!%p819_p1)
}
 0x160   : > { %729 = dma.vmem_to_hbm [thread:$0]  (%p942_p4), %s1088_s21, 16, %s1086_s26, %s478_s29  }
 0x161 PF: > { %p735_p2 = scmp.ge.s32.totalorder %s873_s20, 2  ;;  %s503_s13 = sand.u32 1, %s853_s15  }
 0x162   : > { %s504_s14 = scalar_lea.sflag [#allocation3], %s503_s13 }
 0x163   : > { %p732_p3 = pnand %p735_p2, %p949_p8 }
 0x165   : > { %848 = dma.done.wait (!%p732_p3), %s504_s14, 16  }
 0x166   : > { %850 = vsyncadd (!%p732_p3), %s504_s14, 4294967280  ;;  %s17_s20 = sadd.s32 1, %s873_s20   ;;  %s1142_s15 = smov %s857_s16 }
 0x167   : > { %p14_p5 = scmp.ge.s32.totalorder %s17_s20, 4   ;;  %s1143_s16 = smov %s861_s17 }
 0x168   : > { %s1144_s17 = smov %s955_s28  ;;  %s1145_s18 = smov %s869_s19 }
 0x169   : > { %s1146_s19 = smov %s1148_s23  ;;  %16 = sbr.rel (!%p14_p5) target bundleno = 4 (0x4), region = 74 }
 0x170   :  { %508 = vsyncpa [#allocation3], 1 }
 0x171   :  { %510 = vsyncpa [#allocation3 + $0x1], 1 }

</bundles_post_ra>
